<compile_context>
chip_gen: v7x
topology: tpu7x:2x2x1
jax: 0.10.0
libtpu: 0.0.40
codegen_flags: <defaults>
</compile_context>

<pallas_src>
import functools

import jax
import jax.numpy as jnp
from jax.experimental import pallas as pl
from jax.experimental.pallas import tpu as pltpu

LANE = 128     # last block dim: multiple of 128 (or equal to full array dim)
SUBLANE = 8    # second-to-last block dim: multiple of 8 (or full array dim)


def _round_up(x: int, m: int) -> int:
    return (x + m - 1) // m * m


def _vmem_capacity_bytes() -> int:
    """Physical VMEM per TensorCore; conservative fallback (v7x = 64 MiB)."""
    try:
        info = pltpu.get_tpu_info()
        cap = getattr(info, "vmem_capacity_bytes", None)
        if cap:
            return int(cap)
    except Exception:
        pass
    return 64 * 1024 * 1024


def _mlp_kernel(x_ref, *refs, num_layers: int, compute_dtype):
    """Fused MLP for one (TM, K0) tile of rows.

    refs = (w0, b0, ..., w_{L-1}, b_{L-1}, o_ref).  Weights/biases are whole
    (padded) arrays, VMEM-resident across the grid (constant index_maps), so
    intermediate activations never round-trip to HBM.
    """
    o_ref = refs[-1]
    wb = refs[:-1]
    h = x_ref[...]
    for li in range(num_layers):
        w = wb[2 * li][...]                        # (Kpad, Npad) compute_dtype
        b = wb[2 * li + 1][...]                    # (1, Npad) f32
        y = jnp.dot(h.astype(compute_dtype), w,
                    preferred_element_type=jnp.float32)
        y = y + b                                  # bias add in f32
        if li < num_layers - 1:
            y = jnp.maximum(y, 0.0)                # ReLU on all but last layer
        h = y
    # Narrow (masked) store: drop the zero-padded tail columns in-kernel so
    # the HBM writeback is out_dim wide, not a full 128-lane slab.
    o_ref[...] = h[:, : o_ref.shape[-1]].astype(o_ref.dtype)


def _prepare_params(params, *, compute_dtype):
    """Zero-pad (exact) and cast the weights ONCE; reused on every forward.

    Weight li becomes (Kpad_li, Npad_li) in compute_dtype; bias li becomes
    (1, Npad_li) and stays f32 (negligible bytes, exact f32 bias add).
    Returns (flat list [w0, b0, w1, b1, ...], padded widths [K0, N0, ..., N_L]).
    """
    in_dim = params[0][0].shape[0]
    widths = [_round_up(in_dim, LANE)]
    flat = []
    for li, (w, b) in enumerate(params):
        k, n = w.shape
        kp = widths[li]
        np_ = _round_up(n, LANE)
        wp = jnp.pad(w, ((0, kp - k), (0, np_ - n))).astype(compute_dtype)
        bp = jnp.pad(b, (0, np_ - n)).reshape(1, np_).astype(jnp.float32)
        flat += [wp, bp]
        widths.append(np_)
    return flat, widths


def make_mlp(params, *, compute_dtype=jnp.bfloat16, tm=512):
    """Build a fused-MLP forward: x (..., input_dim) -> (..., output_dim).

    ReLU on all but the last layer (matches the PyTorch MLP).  Weight
    padding/casting happens here, once; the returned closure only casts/pads
    x and launches ONE pallas_call per forward.
    """
    num_layers = len(params)
    in_dim = params[0][0].shape[0]
    out_dim = params[-1][0].shape[1]
    flat, widths = _prepare_params(params, compute_dtype=compute_dtype)
    k0 = widths[0]
    max_w = max(widths)
    cd_size = jnp.dtype(compute_dtype).itemsize
    param_bytes = sum(int(a.size) * a.dtype.itemsize for a in flat)

    kernel = functools.partial(_mlp_kernel, num_layers=num_layers,
                               compute_dtype=compute_dtype)

    def forward(x):
        assert x.shape[-1] == in_dim, (x.shape, in_dim)
        lead_shape = x.shape[:-1]
        out_dtype = x.dtype
        out_size = jnp.dtype(out_dtype).itemsize

        xm = x.reshape(-1, in_dim)     # fold all leading axes into one grid dim
        M = xm.shape[0]

        # ---- M tiling: no row padding; even step count for megacore (v7x) --
        n_steps = pl.cdiv(M, tm)
        if n_steps > 1 and n_steps % 2:
            n_steps += 1               # e.g. 2:2 instead of 2:1 across two TCs
        TM = _round_up(pl.cdiv(M, n_steps), SUBLANE)
        grid = (pl.cdiv(M, TM),)

        # ---- x: cast to MXU dtype + pad only the K columns (lane-aligned) --
        xp = xm.astype(compute_dtype)
        if k0 != in_dim:
            xp = jnp.pad(xp, ((0, 0), (0, k0 - in_dim)))

        # ---- BlockSpecs -----------------------------------------------------
        in_specs = [pl.BlockSpec((TM, k0), lambda i: (i, 0))]
        for li in range(num_layers):
            kp, np_ = widths[li], widths[li + 1]
            in_specs.append(pl.BlockSpec((kp, np_), lambda i: (0, 0)))
            in_specs.append(pl.BlockSpec((1, np_), lambda i: (0, 0)))
        out_specs = pl.BlockSpec((TM, out_dim), lambda i: (i, 0))

        # ---- scheduler hints: cost estimate + generation-aware VMEM budget -
        flops = sum(2 * M * widths[li] * widths[li + 1]
                    for li in range(num_layers))
        bytes_accessed = (M * k0 * cd_size + param_bytes
                          + M * out_dim * out_size)
        cost = pl.CostEstimate(flops=int(flops), transcendentals=0,
                               bytes_accessed=int(bytes_accessed))

        needed = (2 * param_bytes                    # (double-buffered) weights
                  + 2 * TM * k0 * cd_size            # x tile, double buffer
                  + 2 * TM * out_dim * out_size      # out tile, double buffer
                  + 4 * TM * max_w * 4)              # f32 intermediates / spill
        budget = (_vmem_capacity_bytes() * 3) // 4   # leave Mosaic headroom
        vmem_limit = int(min(max(2 * needed, 32 * 1024 * 1024), budget))

        out = pl.pallas_call(
            kernel,
            out_shape=jax.ShapeDtypeStruct((M, out_dim), out_dtype),
            grid=grid,
            in_specs=in_specs,
            out_specs=out_specs,
            compiler_params=pltpu.CompilerParams(
                dimension_semantics=("parallel",),
                vmem_limit_bytes=vmem_limit),
            cost_estimate=cost,
        )(xp, *flat)
        return out.reshape(*lead_shape, out_dim)

    return forward


def init_mlp_params(key, input_dim, hidden_dim, output_dim, num_layers,
                    dtype=jnp.float32):
    """Deterministic synthetic params matching nn.Linear shapes.

    torch stores weight as (out, in); we keep it pre-transposed as (in, out).
    """
    h = [hidden_dim] * (num_layers - 1)
    dims_in = [input_dim] + h
    dims_out = h + [output_dim]
    params = []
    for n_in, n_out in zip(dims_in, dims_out):
        key, kw, kb = jax.random.split(key, 3)
        bound = 1.0 / jnp.sqrt(jnp.asarray(n_in, dtype))
        w = jax.random.uniform(kw, (n_in, n_out), dtype, -bound, bound)
        b = jax.random.uniform(kb, (n_out,), dtype, -bound, bound)
        params.append((w, b))
    return params


def mlp_reference(x, params):
    """Plain-JAX reference mirroring the PyTorch forward."""
    num_layers = len(params)
    for i, (w, b) in enumerate(params):
        x = jnp.dot(x, w) + b
        if i < num_layers - 1:
            x = jax.nn.relu(x)
    return x


if __name__ == "__main__":
    key = jax.random.PRNGKey(0)

    # DETR-style FFN head: MLP applied per query embedding.
    input_dim, hidden_dim, output_dim, num_layers = 32, 32, 4, 3
    params = init_mlp_params(key, input_dim, hidden_dim, output_dim, num_layers)

    key, kx = jax.random.split(key)
    x_small = jax.random.normal(kx, (2, 8, input_dim), jnp.float32)
    key, kx = jax.random.split(key)
    x_big = jax.random.normal(kx, (2, 300, input_dim), jnp.float32)

    # Test 1: exactness check with f32 compute path (single M tile).
    mlp_f32 = make_mlp(params, compute_dtype=jnp.float32)
    out = jax.block_until_ready(mlp_f32(x_small))
    ref = mlp_reference(x_small, params)
    assert out.shape == (2, 8, output_dim), out.shape
    assert jnp.allclose(out, ref, atol=1e-4, rtol=1e-4), \
        float(jnp.max(jnp.abs(out - ref)))

    # Test 2: bf16 MXU-input path on larger M (tiled, megacore-even grid with
    # a masked boundary block); looser tolerance for the bf16 inputs.
    mlp_bf16 = make_mlp(params, compute_dtype=jnp.bfloat16)
    out_b = jax.block_until_ready(mlp_bf16(x_big))
    ref_b = mlp_reference(x_big, params)
    assert out_b.shape == (2, 300, output_dim), out_b.shape
    assert jnp.allclose(out_b, ref_b, atol=5e-2, rtol=5e-2), \
        float(jnp.max(jnp.abs(out_b - ref_b)))

    print("KERNEL_OK")
</pallas_src>

<mosaic_0001>
module attributes {stable_mosaic.version = 11 : i64} {
  func.func @_mlp_kernel(%arg0: i32, %arg1: memref<16x128xf32, #tpu.memory_space<vmem>>, %arg2: memref<128x128xf32, #tpu.memory_space<vmem>>, %arg3: memref<1x128xf32, #tpu.memory_space<vmem>>, %arg4: memref<128x128xf32, #tpu.memory_space<vmem>>, %arg5: memref<1x128xf32, #tpu.memory_space<vmem>>, %arg6: memref<128x128xf32, #tpu.memory_space<vmem>>, %arg7: memref<1x128xf32, #tpu.memory_space<vmem>>, %arg8: memref<16x4xf32, #tpu.memory_space<vmem>>) attributes {dimension_semantics = [#tpu.dimension_semantics<parallel>], iteration_bounds = array<i64: 1>, scalar_prefetch = 0 : i64, scratch_operands = 0 : i64, tpu.core_type = #tpu.core_type<tc>, window_params = [{transform_indices = @transform_0, window_bounds = array<i64: 16, 128>}, {pipeline_mode = #tpu.pipeline_mode<synchronous>, transform_indices = @transform_1, window_bounds = array<i64: 128, 128>}, {pipeline_mode = #tpu.pipeline_mode<synchronous>, transform_indices = @transform_2, window_bounds = array<i64: 1, 128>}, {pipeline_mode = #tpu.pipeline_mode<synchronous>, transform_indices = @transform_3, window_bounds = array<i64: 128, 128>}, {pipeline_mode = #tpu.pipeline_mode<synchronous>, transform_indices = @transform_4, window_bounds = array<i64: 1, 128>}, {pipeline_mode = #tpu.pipeline_mode<synchronous>, transform_indices = @transform_5, window_bounds = array<i64: 128, 128>}, {pipeline_mode = #tpu.pipeline_mode<synchronous>, transform_indices = @transform_6, window_bounds = array<i64: 1, 128>}, {transform_indices = @transform_7, window_bounds = array<i64: 16, 4>}]} {
    %c0 = arith.constant 0 : index
    %c0_0 = arith.constant 0 : index
    %0 = vector.load %arg1[%c0, %c0_0] : memref<16x128xf32, #tpu.memory_space<vmem>>, vector<16x128xf32>
    %c0_1 = arith.constant 0 : index
    %c0_2 = arith.constant 0 : index
    %1 = vector.load %arg2[%c0_1, %c0_2] : memref<128x128xf32, #tpu.memory_space<vmem>>, vector<128x128xf32>
    %c0_3 = arith.constant 0 : index
    %c0_4 = arith.constant 0 : index
    %2 = vector.load %arg3[%c0_3, %c0_4] : memref<1x128xf32, #tpu.memory_space<vmem>>, vector<1x128xf32>
    %cst = arith.constant dense<0.000000e+00> : vector<16x128xf32>
    %3 = tpu.matmul %0, %1, %cst {dimension_numbers = #tpu.dot_dimension_numbers<[1], [0], [0], [1], [0, 0, 1, 1], [], []>} : vector<16x128xf32>, vector<128x128xf32>, vector<16x128xf32> -> vector<16x128xf32>
    %4 = vector.broadcast %2 : vector<1x128xf32> to vector<16x128xf32>
    %5 = arith.addf %3, %4 : vector<16x128xf32>
    %cst_5 = arith.constant 0.000000e+00 : f32
    %6 = vector.broadcast %cst_5 : f32 to vector<16x128xf32>
    %7 = arith.maximumf %5, %6 : vector<16x128xf32>
    %c0_6 = arith.constant 0 : index
    %c0_7 = arith.constant 0 : index
    %8 = vector.load %arg4[%c0_6, %c0_7] : memref<128x128xf32, #tpu.memory_space<vmem>>, vector<128x128xf32>
    %c0_8 = arith.constant 0 : index
    %c0_9 = arith.constant 0 : index
    %9 = vector.load %arg5[%c0_8, %c0_9] : memref<1x128xf32, #tpu.memory_space<vmem>>, vector<1x128xf32>
    %cst_10 = arith.constant dense<0.000000e+00> : vector<16x128xf32>
    %10 = tpu.matmul %7, %8, %cst_10 {dimension_numbers = #tpu.dot_dimension_numbers<[1], [0], [0], [1], [0, 0, 1, 1], [], []>} : vector<16x128xf32>, vector<128x128xf32>, vector<16x128xf32> -> vector<16x128xf32>
    %11 = vector.broadcast %9 : vector<1x128xf32> to vector<16x128xf32>
    %12 = arith.addf %10, %11 : vector<16x128xf32>
    %cst_11 = arith.constant 0.000000e+00 : f32
    %13 = vector.broadcast %cst_11 : f32 to vector<16x128xf32>
    %14 = arith.maximumf %12, %13 : vector<16x128xf32>
    %c0_12 = arith.constant 0 : index
    %c0_13 = arith.constant 0 : index
    %15 = vector.load %arg6[%c0_12, %c0_13] : memref<128x128xf32, #tpu.memory_space<vmem>>, vector<128x128xf32>
    %c0_14 = arith.constant 0 : index
    %c0_15 = arith.constant 0 : index
    %16 = vector.load %arg7[%c0_14, %c0_15] : memref<1x128xf32, #tpu.memory_space<vmem>>, vector<1x128xf32>
    %cst_16 = arith.constant dense<0.000000e+00> : vector<16x128xf32>
    %17 = tpu.matmul %14, %15, %cst_16 {dimension_numbers = #tpu.dot_dimension_numbers<[1], [0], [0], [1], [0, 0, 1, 1], [], []>} : vector<16x128xf32>, vector<128x128xf32>, vector<16x128xf32> -> vector<16x128xf32>
    %18 = vector.broadcast %16 : vector<1x128xf32> to vector<16x128xf32>
    %19 = arith.addf %17, %18 : vector<16x128xf32>
    %20 = vector.extract_strided_slice %19 {offsets = [0, 0], sizes = [16, 4], strides = [1, 1]} : vector<16x128xf32> to vector<16x4xf32>
    %c0_17 = arith.constant 0 : index
    %c0_18 = arith.constant 0 : index
    %21 = vector.load %arg8[%c0_17, %c0_18] : memref<16x4xf32, #tpu.memory_space<vmem>>, vector<16x4xf32>
    tpu.vector_store %arg8[%c0_17, %c0_18], %20 {strides = array<i32>} : memref<16x4xf32, #tpu.memory_space<vmem>>, vector<16x4xf32>,
    return
  }
  func.func @transform_0(%arg0: i32) -> (i32, i32) {
    %c0_i32 = arith.constant 0 : i32
    %c0_i32_0 = arith.constant 0 : i32
    return %arg0, %c0_i32 : i32, i32
  }
  func.func @transform_1(%arg0: i32) -> (i32, i32) {
    %c0_i32 = arith.constant 0 : i32
    %c0_i32_0 = arith.constant 0 : i32
    %c0_i32_1 = arith.constant 0 : i32
    return %c0_i32, %c0_i32_0 : i32, i32
  }
  func.func @transform_2(%arg0: i32) -> (i32, i32) {
    %c0_i32 = arith.constant 0 : i32
    %c0_i32_0 = arith.constant 0 : i32
    %c0_i32_1 = arith.constant 0 : i32
    return %c0_i32, %c0_i32_0 : i32, i32
  }
  func.func @transform_3(%arg0: i32) -> (i32, i32) {
    %c0_i32 = arith.constant 0 : i32
    %c0_i32_0 = arith.constant 0 : i32
    %c0_i32_1 = arith.constant 0 : i32
    return %c0_i32, %c0_i32_0 : i32, i32
  }
  func.func @transform_4(%arg0: i32) -> (i32, i32) {
    %c0_i32 = arith.constant 0 : i32
    %c0_i32_0 = arith.constant 0 : i32
    %c0_i32_1 = arith.constant 0 : i32
    return %c0_i32, %c0_i32_0 : i32, i32
  }
  func.func @transform_5(%arg0: i32) -> (i32, i32) {
    %c0_i32 = arith.constant 0 : i32
    %c0_i32_0 = arith.constant 0 : i32
    %c0_i32_1 = arith.constant 0 : i32
    return %c0_i32, %c0_i32_0 : i32, i32
  }
  func.func @transform_6(%arg0: i32) -> (i32, i32) {
    %c0_i32 = arith.constant 0 : i32
    %c0_i32_0 = arith.constant 0 : i32
    %c0_i32_1 = arith.constant 0 : i32
    return %c0_i32, %c0_i32_0 : i32, i32
  }
  func.func @transform_7(%arg0: i32) -> (i32, i32) {
    %c0_i32 = arith.constant 0 : i32
    %c0_i32_0 = arith.constant 0 : i32
    return %arg0, %c0_i32 : i32, i32
  }
}

</mosaic_0001>

<bundles_post_ra>
// kernel: tpu_custom_call.1
= control target key start
LH: loop header
LB: loop body
LE: loop exit
PB: predicated region body
PF: predicated region fallthrough
CT: control target
= control target key end

     0   :  { %12 = vsyncpa [#allocation3], 0  ;;  %s884_s0 = inlined_call_operand.hbm [shape: f32[16,128], index: 0, kind: input, shape index: {}]   ;;  %s885_s1 = inlined_call_operand.hbm [shape: f32[128,128], index: 1, kind: input, shape index: {}]   ;;  %s886_s2 = inlined_call_operand.vmem [shape: f32[1,128], index: 2, kind: input, shape index: {}]   ;;  %s887_s3 = inlined_call_operand.hbm [shape: f32[128,128], index: 3, kind: input, shape index: {}]   ;;  %s888_s4 = inlined_call_operand.vmem [shape: f32[1,128], index: 4, kind: input, shape index: {}]   ;;  %s889_s5 = inlined_call_operand.hbm [shape: f32[128,128], index: 5, kind: input, shape index: {}]   ;;  %s890_s6 = inlined_call_operand.vmem [shape: f32[1,128], index: 6, kind: input, shape index: {}]   ;;  %s891_s7 = inlined_call_operand.vmem [shape: f32[16,4], index: 7, kind: output, shape index: {}]  }
   0x1   :  { %13 = vsyncpa [#allocation5], 0 }
   0x2   :  { %14 = vsyncpa [#allocation8], 0  ;;  %s749_s24 = smov [#allocation4]   ;;  %s750_s26 = smov [#allocation2]  }
   0x3   :  { %s32_s25 = sshll.u32 %s749_s24, 4  ;;  %s20_s27 = sshll.u32 %s750_s26, 4  ;;  %s33_s25 = int_to_ptr.vmem [resolvable:$true] %s32_s25  ;;  %s795_s27 = int_to_ptr.vmem [resolvable:$true] %s20_s27 }
   0x4   :  { %s655_s30 = scalar_lea.hbm %s885_s1, 2048 }
   0x5   :  { %p656_p0 = scmp.ne.s32.totalorder %s885_s1, %s655_s30  ;;  %p659_p1 = scmp.lt.u32.totalorder %s655_s30, %s885_s1 }
   0x7   :  { %p661_p2 = pnand %p659_p1, %p656_p0 }
   0x9   :  { %664 = shalt.err (!%p661_p2)
}
   0xa   :  { %s665_s12 = scalar_lea.vmem %s33_s25, 2048  ;;  %p670_p4 = scmp.lt.s32.totalorder %s33_s25, %s33_s25 }
   0xb   :  { %p666_p3 = scmp.ne.s32.totalorder %s33_s25, %s665_s12  ;;  %p671_p5 = scmp.lt.s32.totalorder %s665_s12, %s665_s12 }
   0xd   :  { %p672_p6 = por %p671_p5, %p670_p4 }
   0xf   :  { %p673_p7 = pnand %p672_p6, %p666_p3 }
  0x11   :  { %676 = shalt.err (!%p673_p7)
}
  0x12   :  { %s751_s13 = smov 128   ;;  %s752_s14 = smov 8  }
  0x13   :  { %38 = dma.hbm_to_vmem [thread:$0]  %s885_s1, 2048, %s33_s25, [#allocation5], %s751_s13, %s751_s13, %s752_s14  }
  0x14   :  { %s677_s19 = scalar_lea.hbm %s884_s0, 256 }
  0x15   :  { %p678_p8 = scmp.ne.s32.totalorder %s884_s0, %s677_s19  ;;  %p681_p9 = scmp.lt.u32.totalorder %s677_s19, %s884_s0 }
  0x17   :  { %p683_p10 = pnand %p681_p9, %p678_p8 }
  0x19   :  { %686 = shalt.err (!%p683_p10)
}
  0x1a   :  { %s687_s24 = scalar_lea.vmem %s795_s27, 256  ;;  %p692_p12 = scmp.lt.s32.totalorder %s795_s27, %s795_s27 }
  0x1b   :  { %p688_p11 = scmp.ne.s32.totalorder %s795_s27, %s687_s24  ;;  %p693_p13 = scmp.lt.s32.totalorder %s687_s24, %s687_s24 }
  0x1d   :  { %p694_p0 = por %p693_p13, %p692_p12 }
  0x1f   :  { %p695_p1 = pnand %p694_p0, %p688_p11 }
  0x21   :  { %698 = shalt.err (!%p695_p1)
}
  0x22   :  { %26 = dma.hbm_to_vmem [thread:$0]  %s884_s0, 256, %s795_s27, [#allocation3], %s751_s13, %s751_s13, %s752_s14  }
  0x23   :  { %s753_s26 = smov [#allocation6]   ;;  %s754_s29 = smov [#allocation7]  }
  0x24   :  { %s46_s28 = sshll.u32 %s753_s26, 4  ;;  %s60_s30 = sshll.u32 %s754_s29, 4  ;;  %s47_s28 = int_to_ptr.vmem [resolvable:$true] %s46_s28  ;;  %s832_s30 = int_to_ptr.vmem [resolvable:$true] %s60_s30 }
  0x25   :  { %s699_s10 = scalar_lea.hbm %s887_s3, 2048 }
  0x26   :  { %p700_p2 = scmp.ne.s32.totalorder %s887_s3, %s699_s10  ;;  %p703_p3 = scmp.lt.u32.totalorder %s699_s10, %s887_s3 }
  0x28   :  { %p705_p4 = pnand %p703_p3, %p700_p2 }
  0x2a   :  { %708 = shalt.err (!%p705_p4)
}
  0x2b   :  { %s709_s0 = scalar_lea.vmem %s47_s28, 2048  ;;  %p714_p6 = scmp.lt.s32.totalorder %s47_s28, %s47_s28 }
  0x2c   :  { %p710_p5 = scmp.ne.s32.totalorder %s47_s28, %s709_s0  ;;  %p715_p7 = scmp.lt.s32.totalorder %s709_s0, %s709_s0 }
  0x2e   :  { %p716_p8 = por %p715_p7, %p714_p6 }
  0x30   :  { %p717_p9 = pnand %p716_p8, %p710_p5 }
  0x32   :  { %720 = shalt.err (!%p717_p9)
}
  0x33   :  { %52 = dma.hbm_to_vmem [thread:$0]  %s887_s3, 2048, %s47_s28, [#allocation5], %s751_s13, %s751_s13, %s752_s14  }
  0x34   :  { %s721_s20 = scalar_lea.hbm %s889_s5, 2048 }
  0x35   :  { %p722_p10 = scmp.ne.s32.totalorder %s889_s5, %s721_s20  ;;  %p725_p11 = scmp.lt.u32.totalorder %s721_s20, %s889_s5 }
  0x37   :  { %p727_p12 = pnand %p725_p11, %p722_p10 }
  0x39   :  { %730 = shalt.err (!%p727_p12)
}
  0x3a   :  { %s731_s1 = scalar_lea.vmem %s832_s30, 2048  ;;  %p736_p0 = scmp.lt.s32.totalorder %s832_s30, %s832_s30 }
  0x3b   :  { %p732_p13 = scmp.ne.s32.totalorder %s832_s30, %s731_s1  ;;  %p737_p1 = scmp.lt.s32.totalorder %s731_s1, %s731_s1 }
  0x3d   :  { %p738_p2 = por %p737_p1, %p736_p0 }
  0x3f   :  { %p739_p3 = pnand %p738_p2, %p732_p13 }
  0x41   :  { %742 = shalt.err (!%p739_p3)
}
  0x42   :  { %66 = dma.hbm_to_vmem [thread:$0]  %s889_s5, 2048, %s832_s30, [#allocation8], %s751_s13, %s751_s13, %s752_s14  }
  0x43   :  { %743 = dma.done.wait [#allocation3], 256  }
  0x44   :  { %744 = vsyncadd [#allocation3], 4294967040 }
  0x45   :  { %745 = dma.done.wait [#allocation5], 4096  }
  0x46   :  { %746 = vsyncadd [#allocation5], 4294963200 }
  0x47   :  { %747 = dma.done.wait [#allocation8], 2048  }
  0x48   :  { %748 = vsyncadd [#allocation8], 4294965248  ;;  %v83_v0 = vld [vmem:[#allocation4] sm:$0xff]  ;;  %v84_v1 = vld [vmem:[#allocation4 + $0x8] sm:$0xff]  ;;  %vm381_vm0 = vcmask 31744  }
  0x49   :  { %v85_v2 = vld [vmem:[#allocation4 + $0x10] sm:$0xff]  ;;  %v553_v3 = vpack.c.bf16 %v84_v1, %v83_v0  ;;  %v86_v4 = vld [vmem:[#allocation4 + $0x18] sm:$0xff]  ;;  %v87_v6 = vld [vmem:[#allocation4 + $0x20] sm:$0xff] }
  0x4a   :  { %v557_v5 = vpack.c.bf16 %v86_v4, %v85_v2  ;;  %v88_v7 = vld [vmem:[#allocation4 + $0x28] sm:$0xff]  ;;  %v89_v9 = vld [vmem:[#allocation4 + $0x30] sm:$0xff]  ;;  %v90_v10 = vld [vmem:[#allocation4 + $0x38] sm:$0xff] }
  0x4b   :  { %554 = vmatprep.subr.bf16.mxu0 %v553_v3  ;;  %v561_v8 = vpack.c.bf16 %v88_v7, %v87_v6  ;;  %v81_v11 = vld [vmem:[#allocation2] sm:$0xff]  ;;  %v183_v12 = vld [vmem:[#allocation6] sm:$0xff]  ;;  %v184_v13 = vld [vmem:[#allocation6 + $0x8] sm:$0xff]  ;;  %v565_v20 = vpack.c.bf16 %v90_v10, %v89_v9 }
  0x4c   :  { %556 = vmatpush3.bf16.msra.mxu0 %v553_v3  ;;  %480 = vmatprep.mubr.f32.mxu0 %v81_v11  ;;  %v185_v14 = vld [vmem:[#allocation6 + $0x10] sm:$0xff]  ;;  %v585_v15 = vpack.c.bf16 %v184_v13, %v183_v12  ;;  %v186_v16 = vld [vmem:[#allocation6 + $0x18] sm:$0xff]  ;;  %v187_v18 = vld [vmem:[#allocation6 + $0x20] sm:$0xff] }
  0x4d   :  { %558 = vmatprep.subr.bf16.mxu0 %v557_v5  ;;  %v589_v17 = vpack.c.bf16 %v186_v16, %v185_v14  ;;  %v188_v19 = vld [vmem:[#allocation6 + $0x28] sm:$0xff]  ;;  %v91_v21 = vld [vmem:[#allocation4 + $0x40] sm:$0xff]  ;;  %v189_v24 = vld [vmem:[#allocation6 + $0x30] sm:$0xff] }
  0x4e   :  { %586 = vmatprep.subr.bf16.mxu1 %v585_v15  ;;  %v92_v22 = vld [vmem:[#allocation4 + $0x48] sm:$0xff]  ;;  %v593_v23 = vpack.c.bf16 %v188_v19, %v187_v18  ;;  %v190_v25 = vld [vmem:[#allocation6 + $0x38] sm:$0xff]  ;;  %v93_v27 = vld [vmem:[#allocation4 + $0x50] sm:$0xff] }
  0x4f   :  { %588 = vmatpush3.bf16.msra.mxu1 %v585_v15  ;;  %v569_v26 = vpack.c.bf16 %v92_v22, %v91_v21  ;;  %v94_v28 = vld [vmem:[#allocation4 + $0x58] sm:$0xff]  ;;  %v597_v29 = vpack.c.bf16 %v190_v25, %v189_v24  ;;  %v191_v30 = vld [vmem:[#allocation6 + $0x40] sm:$0xff]  ;;  %v192_v31 = vld [vmem:[#allocation6 + $0x48] sm:$0xff] }
  0x50   :  { %560 = vmatpush3.bf16.msra.mxu0 %v557_v5  ;;  %590 = vmatprep.subr.bf16.mxu1 %v589_v17  ;;  %v573_v32 = vpack.c.bf16 %v94_v28, %v93_v27  ;;  %v95_v33 = vld [vmem:[#allocation4 + $0x60] sm:$0xff]  ;;  %v96_v34 = vld [vmem:[#allocation4 + $0x68] sm:$0xff]  ;;  %v601_v35 = vpack.c.bf16 %v192_v31, %v191_v30  ;;  %v193_v36 = vld [vmem:[#allocation6 + $0x50] sm:$0xff] }
  0x51   :  { %562 = vmatprep.subr.bf16.mxu0 %v561_v8  ;;  %v194_v37 = vld [vmem:[#allocation6 + $0x58] sm:$0xff]  ;;  %v577_v38 = vpack.c.bf16 %v96_v34, %v95_v33  ;;  %v97_v39 = vld [vmem:[#allocation4 + $0x70] sm:$0xff]  ;;  %v195_v42 = vld [vmem:[#allocation6 + $0x60] sm:$0xff] }
  0x52   :  { %v98_v40 = vld [vmem:[#allocation4 + $0x78] sm:$0xff]  ;;  %v605_v41 = vpack.c.bf16 %v194_v37, %v193_v36  ;;  %v196_v43 = vld [vmem:[#allocation6 + $0x68] sm:$0xff]  ;;  %v197_v47 = vld [vmem:[#allocation6 + $0x70] sm:$0xff] }
  0x53   :  { %592 = vmatpush3.bf16.msra.mxu1 %v589_v17  ;;  %v581_v44 = vpack.c.bf16 %v98_v40, %v97_v39  ;;  %v609_v45 = vpack.c.bf16 %v196_v43, %v195_v42  ;;  %v82_v46 = vld [vmem:[#allocation2 + $0x8] sm:$0xff]  ;;  %v283_v50 = vld [vmem:[#allocation7] sm:$0xff]  ;;  %v284_v51 = vld [vmem:[#allocation7 + $0x8] sm:$0xff] }
  0x54   :  { %564 = vmatpush3.bf16.msra.mxu0 %v561_v8  ;;  %594 = vmatprep.subr.bf16.mxu1 %v593_v23  ;;  %v198_v48 = vld [vmem:[#allocation6 + $0x78] sm:$0xff]  ;;  %v285_v52 = vld [vmem:[#allocation7 + $0x10] sm:$0xff]  ;;  %v617_v53 = vpack.c.bf16 %v284_v51, %v283_v50  ;;  %v287_v56 = vld [vmem:[#allocation7 + $0x20] sm:$0xff] }
  0x55   :  { %566 = vmatprep.subr.bf16.mxu0 %v565_v20  ;;  %v613_v49 = vpack.c.bf16 %v198_v48, %v197_v47  ;;  %v286_v54 = vld [vmem:[#allocation7 + $0x18] sm:$0xff]  ;;  %v288_v57 = vld [vmem:[#allocation7 + $0x28] sm:$0xff]  ;;  %v289_v59 = vld [vmem:[#allocation7 + $0x30] sm:$0xff] }
  0x56   :  { %v621_v55 = vpack.c.bf16 %v286_v54, %v285_v52  ;;  %v625_v58 = vpack.c.bf16 %v288_v57, %v287_v56  ;;  %v290_v60 = vld [vmem:[#allocation7 + $0x38] sm:$0xff]  ;;  %v291_v62 = vld [vmem:[#allocation7 + $0x40] sm:$0xff]  ;;  %v292_v63 = vld [vmem:[#allocation7 + $0x48] sm:$0xff] }
  0x57   :  { %596 = vmatpush3.bf16.msra.mxu1 %v593_v23  ;;  %v629_v61 = vpack.c.bf16 %v290_v60, %v289_v59  ;;  %v633_v0 = vpack.c.bf16 %v292_v63, %v291_v62  ;;  %v293_v1 = vld [vmem:[#allocation7 + $0x50] sm:$0xff]  ;;  %v294_v2 = vld [vmem:[#allocation7 + $0x58] sm:$0xff]  ;;  %v295_v4 = vld [vmem:[#allocation7 + $0x60] sm:$0xff] }
  0x58   :  { %568 = vmatpush3.bf16.msra.mxu0 %v565_v20  ;;  %598 = vmatprep.subr.bf16.mxu1 %v597_v29  ;;  %v637_v3 = vpack.c.bf16 %v294_v2, %v293_v1  ;;  %v296_v5 = vld [vmem:[#allocation7 + $0x68] sm:$0xff]  ;;  %v391_v7 = vld [vmem:[%s886_s2] ss:$0 sm:$0xff]  ;;  %v298_v15 = vld [vmem:[#allocation7 + $0x78] sm:$0xff] }
  0x59   :  { %570 = vmatprep.subr.bf16.mxu0 %v569_v26  ;;  %v641_v6 = vpack.c.bf16 %v296_v5, %v295_v4  ;;  %v297_v14 = vld [vmem:[#allocation7 + $0x70] sm:$0xff] }
  0x5a   :  { %v645_v16 = vpack.c.bf16 %v298_v15, %v297_v14  ;;  %v392_v17 = vld [vmem:[%s888_s4] ss:$0 sm:$0xff] }
  0x5b   :  { %600 = vmatpush3.bf16.msra.mxu1 %v597_v29  ;;  %v393_v24 = vld [vmem:[%s890_s6] ss:$0 sm:$0xff] }
  0x5c   :  { %572 = vmatpush3.bf16.msra.mxu0 %v569_v26  ;;  %602 = vmatprep.subr.bf16.mxu1 %v601_v35 }
  0x5d   :  { %574 = vmatprep.subr.bf16.mxu0 %v573_v32 }
  0x5f   :  { %604 = vmatpush3.bf16.msra.mxu1 %v601_v35 }
  0x60   :  { %576 = vmatpush3.bf16.msra.mxu0 %v573_v32  ;;  %606 = vmatprep.subr.bf16.mxu1 %v605_v41 }
  0x61   :  { %578 = vmatprep.subr.bf16.mxu0 %v577_v38 }
  0x63   :  { %608 = vmatpush3.bf16.msra.mxu1 %v605_v41 }
  0x64   :  { %580 = vmatpush3.bf16.msra.mxu0 %v577_v38  ;;  %610 = vmatprep.subr.bf16.mxu1 %v609_v45 }
  0x65   :  { %582 = vmatprep.subr.bf16.mxu0 %v581_v44 }
  0x67   :  { %612 = vmatpush3.bf16.msra.mxu1 %v609_v45 }
  0x68   :  { %584 = vmatpush3.bf16.msra.mxu0 %v581_v44  ;;  %614 = vmatprep.subr.bf16.mxu1 %v613_v49 }
  0x69   :  { %618 = vmatprep.subr.bf16.mxu0 %v617_v53 }
  0x6b   :  { %481 = vmatmul.mubr.f32.vlgmr.msra.gmra.mrb[0].mxu0 %v82_v46  ;;  %616 = vmatpush3.bf16.msra.mxu1 %v613_v49 }
  0x6c   :  { %620 = vmatpush3.bf16.msra.mxu0 %v617_v53 }
  0x6d   :  { %622 = vmatprep.subr.bf16.mxu0 %v621_v55 }
  0x70   :  { %624 = vmatpush3.bf16.msra.mxu0 %v621_v55 }
  0x71   :  { %626 = vmatprep.subr.bf16.mxu0 %v625_v58 }
  0x74   :  { %628 = vmatpush3.bf16.msra.mxu0 %v625_v58 }
  0x75   :  { %630 = vmatprep.subr.bf16.mxu0 %v629_v61 }
  0x78   :  { %632 = vmatpush3.bf16.msra.mxu0 %v629_v61 }
  0x79   :  { %634 = vmatprep.subr.bf16.mxu0 %v633_v0 }
  0x7c   :  { %636 = vmatpush3.bf16.msra.mxu0 %v633_v0 }
  0x7d   :  { %638 = vmatprep.subr.bf16.mxu0 %v637_v3 }
  0x80   :  { %640 = vmatpush3.bf16.msra.mxu0 %v637_v3 }
  0x81   :  { %642 = vmatprep.subr.bf16.mxu0 %v641_v6 }
  0x84   :  { %644 = vmatpush3.bf16.msra.mxu0 %v641_v6 }
  0x85   :  { %646 = vmatprep.subr.bf16.mxu0 %v645_v16 }
  0x88   :  { %648 = vmatpush3.bf16.msra.mxu0 %v645_v16 }
 0x13e   :  { %v482_v8 = vpop.f32.mrb[0].mxu0 }
 0x13f   :  { %v178_v9 = vadd.f32 %v482_v8, %v391_v7  ;;  %v172_v10 = vpop.f32.mrb[1].mxu0 }
 0x140   :  { %v173_v11 = vadd.f32 %v391_v7, %v172_v10 }
 0x141   :  { %v182_v13 = vmax.f32 %v178_v9, 0.0 }
 0x142   :  { %v181_v12 = vmax.f32 %v173_v11, 0.0 }
 0x144   :  { %515 = vmatprep.mubr.f32.mxu1 %v181_v12 }
 0x145   :  { %516 = vmatmul.mubr.f32.vlgmr.msra.gmra.mrb[0].mxu1 %v182_v13 }
 0x218   :  { %v517_v18 = vpop.f32.mrb[0].mxu1 }
 0x219   :  { %v278_v19 = vadd.f32 %v517_v18, %v392_v17  ;;  %v272_v20 = vpop.f32.mrb[1].mxu1 }
 0x21a   :  { %v273_v21 = vadd.f32 %v392_v17, %v272_v20 }
 0x21b   :  { %v282_v23 = vmax.f32 %v278_v19, 0.0 }
 0x21c   :  { %v281_v22 = vmax.f32 %v273_v21, 0.0 }
 0x21e   :  { %550 = vmatprep.mubr.f32.mxu0 %v281_v22 }
 0x21f   :  { %551 = vmatmul.mubr.f32.vlgmr.msra.gmra.mrb[2].mxu0 %v282_v23 }
 0x2f2   :  { %v552_v25 = vpop.f32.mrb[2].mxu0 }
 0x2f3   :  { %v378_v26 = vadd.f32 %v552_v25, %v393_v24  ;;  %v372_v27 = vpop.f32.mrb[3].mxu0 }
 0x2f4   :  { %v373_v28 = vadd.f32 %v393_v24, %v372_v27 }
 0x2f5   :  { %383 = vst.msk [vmem:[%s891_s7 + $0x8] sm:$0xff] %vm381_vm0, %v378_v26 }
 0x2f6   :  { %382 = vst.msk [vmem:[%s891_s7] sm:$0xff] %vm381_vm0, %v373_v28 }
 0x2f7   :  { %388 = vsyncpa [#allocation3], 1 }
 0x2f8   :  { %389 = vsyncpa [#allocation5], 1 }
 0x2f9   :  { %390 = vsyncpa [#allocation8], 1 }

</bundles_post_ra>
